<compile_context>
chip_gen: v6e
topology: v6e:2x2x1
jax: 0.10.0
libtpu: 0.0.40
codegen_flags: <defaults>
</compile_context>

<pallas_src>
import functools

import jax
import jax.numpy as jnp
from jax.experimental import pallas as pl
from jax.experimental.pallas import tpu as pltpu


def _focus_conv_bn_relu_kernel(w_ref, b_ref, x_ref, o_ref):
    """One (batch, pixel-tile) grid step.

    w_ref: (c2, 4C)  1x1-conv weight with BN scale (gamma/sqrt(var+eps)) folded in
    b_ref: (c2, 1)   folded BN bias = beta - mean * scale  (f32)
    x_ref: (4C, TP)  space-to-depth input slab (channels x pixels), lane-dense
    o_ref: (c2, TP)  output slab
    """
    acc = jnp.dot(w_ref[...], x_ref[...], preferred_element_type=jnp.float32)
    o_ref[...] = jnp.maximum(acc + b_ref[...], 0.0).astype(o_ref.dtype)


def _pick_pixel_tile(P, C, c2, N, tile_pix):
    """Lane-dense pixel-tile width.

    Multiple of 128 (or full extent when P <= 128), sized so per-step DMAs are a
    few MB, 2x double-buffered in+out blocks stay under ~24 MiB (v7x-safe with
    the 32 MiB scoped VMEM limit), the grid keeps >= ~4 steps for v7x's two
    TensorCores, and -- when possible -- the tile divides P exactly so the last
    tile uses unmasked lane-dense stores.
    """
    if P <= 128:
        return P
    bytes_per_pix = (4 * C + c2) * 4                      # f32 in + out per pixel
    vmem_cap = (24 * 1024 * 1024) // (2 * bytes_per_pix)  # 2x double buffering
    steps_needed = -(-4 // N)                             # ceil(4 / N)
    cap = min(tile_pix, vmem_cap, P, -(-P // steps_needed))
    cap = max(128, (cap // 128) * 128)
    for t in range(cap, 127, -128):                       # prefer t | P
        if P % t == 0:
            return t
    return cap


@functools.partial(
    jax.jit, static_argnames=("eps", "tile_pix", "out_dtype", "input_fusion"))
def focus_forward(x, weight, gamma, beta, running_mean, running_var,
                  *, eps=1e-5, tile_pix=16384, out_dtype=None, input_fusion=True):
    """Focus.forward (k=1 path): ReLU(BN(Conv1x1(space_to_depth_concat(x)))).

    x:      (N, C, H, W) NCHW, H and W even
    weight: (c2, 4*C, 1, 1) conv weight (bias=False)
    gamma, beta, running_mean, running_var: (c2,) BatchNorm eval-mode params
    returns (N, c2, H//2, W//2) NCHW
    """
    N, C, H, W = x.shape
    assert H % 2 == 0 and W % 2 == 0, "Focus requires even spatial dims"
    c2, k4c, kh, kw = weight.shape
    assert k4c == 4 * C
    # TODO(synk): Focus with k > 1 (spatial conv after the concat) has no
    # pointwise-matmul form; only the module-default k=1 path is implemented.
    assert kh == 1 and kw == 1, "only k=1 (pointwise conv) is implemented"

    Hh, Wh = H // 2, W // 2
    P = Hh * Wh
    K = 4 * C
    out_dtype = x.dtype if out_dtype is None else out_dtype

    # --- space-to-depth: free reshape + ONE XLA transpose -> channels-major,
    # lane-dense (4C, Hh*Wh) slab per batch element.  The channel order is
    # chosen c-major (k = c*4 + r*2 + s) so the permutation keeps the large
    # leading (N, C) dims in place; the tiny weight is permuted to match below.
    # TODO(synk): lifting the parity deinterleave into the kernel needs stride-2
    # lane slicing, which Mosaic does not reliably lower; instead
    # allow_input_fusion (below) lets XLA fuse this transpose into the
    # pallas_call's input operand.
    xr = x.reshape(N, C, Hh, 2, Wh, 2)             # (n, c, hh, r, wh, s)  free
    xt = jnp.transpose(xr, (0, 1, 3, 5, 2, 4))     # (n, c, r, s, hh, wh)
    xt = xt.reshape(N, K, P)                       # (n, 4C, Hh*Wh) lane-dense

    # --- fold eval-mode BatchNorm: scale into the weight, bias kept separate ---
    scale = gamma.astype(jnp.float32) / jnp.sqrt(running_var.astype(jnp.float32) + eps)
    bias = beta.astype(jnp.float32) - running_mean.astype(jnp.float32) * scale
    # torch concat channel order is (s, r, c)-major -> permute to (c, r, s)-major
    # to match xt's channel order.
    w2 = weight.reshape(c2, 2, 2, C)                          # (o, s, r, c)
    w2 = jnp.transpose(w2, (0, 3, 2, 1)).reshape(c2, K)       # k = c*4 + r*2 + s
    # NOTE: for bf16 inputs the folded weight is cast to bf16 (inference-grade);
    # the f32 unit test below is unaffected.
    w_fold = (w2.astype(jnp.float32) * scale[:, None]).astype(x.dtype)
    bias2 = bias.reshape(c2, 1)                               # stays f32

    tp = _pick_pixel_tile(P, C, c2, N, tile_pix)

    out_flat = pl.pallas_call(
        _focus_conv_bn_relu_kernel,
        out_shape=jax.ShapeDtypeStruct((N, c2, P), out_dtype),
        grid=(N, pl.cdiv(P, tp)),
        in_specs=[
            pl.BlockSpec((c2, K), lambda n, j: (0, 0)),            # folded weight
            pl.BlockSpec((c2, 1), lambda n, j: (0, 0)),            # folded BN bias
            pl.BlockSpec((None, K, tp), lambda n, j: (n, 0, j)),   # input slab
        ],
        out_specs=pl.BlockSpec((None, c2, tp), lambda n, j: (n, 0, j)),
        compiler_params=pltpu.CompilerParams(
            dimension_semantics=("parallel", "parallel"),
            vmem_limit_bytes=32 * 1024 * 1024,
            allow_input_fusion=[False, False, True] if input_fusion else None,
        ),
    )(w_fold, bias2, xt)

    return out_flat.reshape(N, c2, Hh, Wh)         # free reshape back to NCHW


if __name__ == "__main__":
    key = jax.random.PRNGKey(0)
    kx, kw, kg, kb, km, kv = jax.random.split(key, 6)
    N, C, H, W = 2, 4, 16, 16
    c2 = 32
    eps = 1e-5

    x = jax.random.normal(kx, (N, C, H, W), dtype=jnp.float32)
    weight = jax.random.normal(kw, (c2, 4 * C, 1, 1), dtype=jnp.float32) * 0.1
    gamma = jax.random.uniform(kg, (c2,), dtype=jnp.float32, minval=0.5, maxval=1.5)
    beta = jax.random.normal(kb, (c2,), dtype=jnp.float32) * 0.1
    mean = jax.random.normal(km, (c2,), dtype=jnp.float32) * 0.1
    var = jax.random.uniform(kv, (c2,), dtype=jnp.float32, minval=0.5, maxval=1.5)

    try:
        out = focus_forward(x, weight, gamma, beta, mean, var, eps=eps)
        out = jax.block_until_ready(out)
    except Exception:
        # Defensive fallback: retry without the XLA input-fusion hint.
        out = focus_forward(x, weight, gamma, beta, mean, var, eps=eps,
                            input_fusion=False)
        out = jax.block_until_ready(out)

    # --- pure-JAX reference of Focus.forward (eval-mode BatchNorm + ReLU) ---
    x4 = jnp.concatenate(
        [x[:, :, ::2, ::2], x[:, :, 1::2, ::2],
         x[:, :, ::2, 1::2], x[:, :, 1::2, 1::2]], axis=1)
    w2 = weight.reshape(c2, 4 * C)
    conv = jnp.einsum("oc,nchw->nohw", w2, x4,
                      precision=jax.lax.Precision.HIGHEST)
    ref = (conv - mean[None, :, None, None]) / jnp.sqrt(var + eps)[None, :, None, None]
    ref = ref * gamma[None, :, None, None] + beta[None, :, None, None]
    ref = jnp.maximum(ref, 0.0)

    assert out.shape == ref.shape == (N, c2, H // 2, W // 2)
    assert bool(jnp.allclose(out, ref, rtol=1e-2, atol=1e-2)), \
        float(jnp.max(jnp.abs(out - ref)))
    print("KERNEL_OK")
</pallas_src>

<mosaic_0001>
module attributes {stable_mosaic.version = 11 : i64} {
  func.func @_focus_conv_bn_relu_kernel(%arg0: i32, %arg1: i32, %arg2: memref<32x16xf32, #tpu.memory_space<vmem>>, %arg3: memref<32x1xf32, #tpu.memory_space<vmem>>, %arg4: memref<1x16x64xf32, #tpu.memory_space<vmem>>, %arg5: memref<1x32x64xf32, #tpu.memory_space<vmem>>) attributes {dimension_semantics = [#tpu.dimension_semantics<parallel>, #tpu.dimension_semantics<parallel>], iteration_bounds = array<i64: 2, 1>, scalar_prefetch = 0 : i64, scratch_operands = 0 : i64, tpu.core_type = #tpu.core_type<tc>, window_params = [{pipeline_mode = #tpu.pipeline_mode<synchronous>, transform_indices = @transform_0, window_bounds = array<i64: 32, 16>}, {pipeline_mode = #tpu.pipeline_mode<synchronous>, transform_indices = @transform_1, window_bounds = array<i64: 32, 1>}, {transform_indices = @transform_2, window_bounds = array<i64: 1, 16, 64>}, {transform_indices = @transform_3, window_bounds = array<i64: 1, 32, 64>}]} {
    %c0 = arith.constant 0 : index
    %c0_0 = arith.constant 0 : index
    %0 = vector.load %arg2[%c0, %c0_0] : memref<32x16xf32, #tpu.memory_space<vmem>>, vector<32x16xf32>
    %c0_1 = arith.constant 0 : index
    %c0_2 = arith.constant 0 : index
    %c0_3 = arith.constant 0 : index
    %1 = vector.load %arg4[%c0_1, %c0_2, %c0_3] : memref<1x16x64xf32, #tpu.memory_space<vmem>>, vector<1x16x64xf32>
    %2 = vector.shape_cast %1 : vector<1x16x64xf32> to vector<16x64xf32>
    %cst = arith.constant dense<0.000000e+00> : vector<32x64xf32>
    %3 = tpu.matmul %0, %2, %cst {dimension_numbers = #tpu.dot_dimension_numbers<[1], [0], [0], [1], [0, 0, 1, 1], [], []>} : vector<32x16xf32>, vector<16x64xf32>, vector<32x64xf32> -> vector<32x64xf32>
    %c0_4 = arith.constant 0 : index
    %c0_5 = arith.constant 0 : index
    %4 = vector.load %arg3[%c0_4, %c0_5] : memref<32x1xf32, #tpu.memory_space<vmem>>, vector<32x1xf32>
    %5 = vector.broadcast %4 : vector<32x1xf32> to vector<32x64xf32>
    %6 = arith.addf %3, %5 : vector<32x64xf32>
    %cst_6 = arith.constant 0.000000e+00 : f32
    %7 = vector.broadcast %cst_6 : f32 to vector<32x64xf32>
    %8 = arith.maximumf %6, %7 : vector<32x64xf32>
    %c0_7 = arith.constant 0 : index
    %c0_8 = arith.constant 0 : index
    %c0_9 = arith.constant 0 : index
    %9 = vector.load %arg5[%c0_7, %c0_8, %c0_9] : memref<1x32x64xf32, #tpu.memory_space<vmem>>, vector<1x32x64xf32>
    %10 = vector.shape_cast %9 : vector<1x32x64xf32> to vector<32x64xf32>
    %11 = vector.shape_cast %8 : vector<32x64xf32> to vector<1x32x64xf32>
    tpu.vector_store %arg5[%c0_7, %c0_8, %c0_9], %11 {strides = array<i32>} : memref<1x32x64xf32, #tpu.memory_space<vmem>>, vector<1x32x64xf32>,
    return
  }
  func.func @transform_0(%arg0: i32, %arg1: i32) -> (i32, i32) {
    %c0_i32 = arith.constant 0 : i32
    %c0_i32_0 = arith.constant 0 : i32
    %c0_i32_1 = arith.constant 0 : i32
    return %c0_i32, %c0_i32_0 : i32, i32
  }
  func.func @transform_1(%arg0: i32, %arg1: i32) -> (i32, i32) {
    %c0_i32 = arith.constant 0 : i32
    %c0_i32_0 = arith.constant 0 : i32
    %c0_i32_1 = arith.constant 0 : i32
    return %c0_i32, %c0_i32_0 : i32, i32
  }
  func.func @transform_2(%arg0: i32, %arg1: i32) -> (i32, i32, i32) {
    %c0_i32 = arith.constant 0 : i32
    %c0_i32_0 = arith.constant 0 : i32
    return %arg0, %c0_i32, %arg1 : i32, i32, i32
  }
  func.func @transform_3(%arg0: i32, %arg1: i32) -> (i32, i32, i32) {
    %c0_i32 = arith.constant 0 : i32
    %c0_i32_0 = arith.constant 0 : i32
    return %arg0, %c0_i32, %arg1 : i32, i32, i32
  }
}

module attributes {stable_mosaic.version = 11 : i64} {
  func.func @_focus_conv_bn_relu_kernel(%arg0: i32, %arg1: i32, %arg2: memref<32x16xf32, #tpu.memory_space<vmem>>, %arg3: memref<32x1xf32, #tpu.memory_space<vmem>>, %arg4: memref<1x16x64xf32, #tpu.memory_space<vmem>>, %arg5: memref<1x32x64xf32, #tpu.memory_space<vmem>>) attributes {dimension_semantics = [#tpu.dimension_semantics<parallel>, #tpu.dimension_semantics<parallel>], iteration_bounds = array<i64: 2, 1>, scalar_prefetch = 0 : i64, scratch_operands = 0 : i64, tpu.core_type = #tpu.core_type<tc>, window_params = [{pipeline_mode = #tpu.pipeline_mode<synchronous>, transform_indices = @transform_0, window_bounds = array<i64: 32, 16>}, {pipeline_mode = #tpu.pipeline_mode<synchronous>, transform_indices = @transform_1, window_bounds = array<i64: 32, 1>}, {transform_indices = @transform_2, window_bounds = array<i64: 1, 16, 64>}, {transform_indices = @transform_3, window_bounds = array<i64: 1, 32, 64>}]} {
    %c0 = arith.constant 0 : index
    %c0_0 = arith.constant 0 : index
    %0 = vector.load %arg2[%c0, %c0_0] : memref<32x16xf32, #tpu.memory_space<vmem>>, vector<32x16xf32>
    %c0_1 = arith.constant 0 : index
    %c0_2 = arith.constant 0 : index
    %c0_3 = arith.constant 0 : index
    %1 = vector.load %arg4[%c0_1, %c0_2, %c0_3] : memref<1x16x64xf32, #tpu.memory_space<vmem>>, vector<1x16x64xf32>
    %2 = vector.shape_cast %1 : vector<1x16x64xf32> to vector<16x64xf32>
    %cst = arith.constant dense<0.000000e+00> : vector<32x64xf32>
    %3 = tpu.matmul %0, %2, %cst {dimension_numbers = #tpu.dot_dimension_numbers<[1], [0], [0], [1], [0, 0, 1, 1], [], []>} : vector<32x16xf32>, vector<16x64xf32>, vector<32x64xf32> -> vector<32x64xf32>
    %c0_4 = arith.constant 0 : index
    %c0_5 = arith.constant 0 : index
    %4 = vector.load %arg3[%c0_4, %c0_5] : memref<32x1xf32, #tpu.memory_space<vmem>>, vector<32x1xf32>
    %5 = vector.broadcast %4 : vector<32x1xf32> to vector<32x64xf32>
    %6 = arith.addf %3, %5 : vector<32x64xf32>
    %cst_6 = arith.constant 0.000000e+00 : f32
    %7 = vector.broadcast %cst_6 : f32 to vector<32x64xf32>
    %8 = arith.maximumf %6, %7 : vector<32x64xf32>
    %c0_7 = arith.constant 0 : index
    %c0_8 = arith.constant 0 : index
    %c0_9 = arith.constant 0 : index
    %9 = vector.load %arg5[%c0_7, %c0_8, %c0_9] : memref<1x32x64xf32, #tpu.memory_space<vmem>>, vector<1x32x64xf32>
    %10 = vector.shape_cast %9 : vector<1x32x64xf32> to vector<32x64xf32>
    %11 = vector.shape_cast %8 : vector<32x64xf32> to vector<1x32x64xf32>
    tpu.vector_store %arg5[%c0_7, %c0_8, %c0_9], %11 {strides = array<i32>} : memref<1x32x64xf32, #tpu.memory_space<vmem>>, vector<1x32x64xf32>,
    return
  }
  func.func @transform_0(%arg0: i32, %arg1: i32) -> (i32, i32) {
    %c0_i32 = arith.constant 0 : i32
    %c0_i32_0 = arith.constant 0 : i32
    %c0_i32_1 = arith.constant 0 : i32
    return %c0_i32, %c0_i32_0 : i32, i32
  }
  func.func @transform_1(%arg0: i32, %arg1: i32) -> (i32, i32) {
    %c0_i32 = arith.constant 0 : i32
    %c0_i32_0 = arith.constant 0 : i32
    %c0_i32_1 = arith.constant 0 : i32
    return %c0_i32, %c0_i32_0 : i32, i32
  }
  func.func @transform_2(%arg0: i32, %arg1: i32) -> (i32, i32, i32) {
    %c0_i32 = arith.constant 0 : i32
    %c0_i32_0 = arith.constant 0 : i32
    return %arg0, %c0_i32, %arg1 : i32, i32, i32
  }
  func.func @transform_3(%arg0: i32, %arg1: i32) -> (i32, i32, i32) {
    %c0_i32 = arith.constant 0 : i32
    %c0_i32_0 = arith.constant 0 : i32
    return %arg0, %c0_i32, %arg1 : i32, i32, i32
  }
}

</mosaic_0001>

<bundles_post_ra>
// kernel: focus_forward.1
= control target key start
LH: loop header
LB: loop body
LE: loop exit
PB: predicated region body
PF: predicated region fallthrough
CT: control target
= control target key end

     0   :  { %s531_s12 = smov 0   ;;  %s533_s13 = smov 0   ;;  %s596_s0 = inlined_call_operand.vmem [shape: f32[32,16], index: 0, kind: input, shape index: {}]   ;;  %s597_s1 = inlined_call_operand.vmem [shape: f32[32,1], index: 1, kind: input, shape index: {}]   ;;  %s598_s2 = inlined_call_operand.vmem [shape: f32[2,16,64], index: 2, kind: input, shape index: {}]   ;;  %s599_s3 = inlined_call_operand.vmem [shape: f32[2,32,64], index: 3, kind: output, shape index: {}]  }
   0x1   :  { %s535_s14 = smov 0  }
   0x2 LB: > { %s25_s15 = sadd.s32 1, %s504_s13  ;;  %p426_p0 = scmp.ge.s32.totalorder %s508_s14, 1  ;;  %s508_s14 = sphi %s535_s14, %s13_s14   ;;  %s504_s13 = sphi %s533_s13, %s601_s13   ;;  %s500_s12 = sphi %s531_s12, %s600_s12  }
   0x3   : > { %p27_p1 = scmp.ge.s32.totalorder %s25_s15, 2  ;;  %p156_p2 = scmp.lt.s32.totalorder %s508_s14, 3 }
   0x5   : > { %s603_s15 = smov (%p27_p1, %s25_s15), 0  ;;  %p157_p3 = pnand %p426_p0, %p156_p2 }
   0x6   : > { %p186_p4 = scmp.lt.s32.totalorder (!%p157_p3), %s500_s12, 1 }
   0x7   : > { %160 = sbr.rel (%p157_p3) target bundleno = 220 (0xdc), region = 32 }
   0xc   : > { %v202_v0 = vld [vmem:[%s596_s0] sm:$0xff]  ;;  %vm232_vm0 = vcmask 130048   ;;  %v204_v1 = vld [vmem:[%s596_s0 + $0x10] sm:$0xff]  ;;  %s605_s12 = smov (!%p186_p4, %s500_s12), 1  ;;  %v510_v4 = vmov 0   ;;  %v203_v7 = vld [vmem:[%s596_s0 + $0x8] sm:$0xff] }
   0xd   : > { %449 = vmatprep.mubr.msk.f32.mxu0 %vm232_vm0, %v202_v0  ;;  %452 = vmatprep.mubr.msk.f32.mxu1 %vm232_vm0, %v204_v1  ;;  %v210_v2 = vld [vmem:[%s597_s1 + $0x10] sm:$0xff]  ;;  %v208_v3 = vld [vmem:[%s597_s1] sm:$0xff]  ;;  %s437_s24 = sshll.u32 %s605_s12, 4  ;;  %v205_v8 = vld [vmem:[%s596_s0 + $0x18] sm:$0xff]  ;;  %s438_s9 = sshll.u32 %s605_s12, 5  ;;  %vm334_vm1 = vcmask 523264  }
   0xe   : > { %485 = vset.pattern.permute.xlu1 %v510_v4  ;;  %484 = vset.pattern.permute.xlu0 %v510_v4  ;;  %s193_s27 = scalar_lea.vmem %s598_s2, %s437_s24  ;;  %v211_v9 = vld [vmem:[%s597_s1 + $0x18] sm:$0xff]  ;;  %v209_v10 = vld [vmem:[%s597_s1 + $0x8] sm:$0xff]  ;;  %s201_s16 = scalar_lea.vmem %s599_s3, %s438_s9 }
   0xf   : > { %224 = vperm.xlu1 %485, %v210_v2   ;;  %214 = vperm.xlu0 %484, %v208_v3   ;;  %v207_v5 = vld [vmem:[%s193_s27 + $0x8] sm:$0xff]  ;;  %v206_v6 = vld [vmem:[%s193_s27] sm:$0xff] }
  0x10   : > { %445 = vmatprep.subr.mxu0 %v207_v5  ;;  %455 = vmatprep.subr.mxu1 %v207_v5 }
  0x11   : > { %446 = vmatpush3.msra.mxu0 %v207_v5  ;;  %457 = vmatpush3.msra.mxu1 %v207_v5 }
  0x12   : > { %447 = vmatprep.subr.mxu0 %v206_v6  ;;  %456 = vmatprep.subr.mxu1 %v206_v6 }
  0x13   : > { %448 = vmatpush3.msra.mxu0 %v206_v6  ;;  %458 = vmatpush3.msra.mxu1 %v206_v6 }
  0x14   : > { %450 = vmatmul.mubr.msk.f32.vlgmr.msra.gmra.mxu0 %vm232_vm0, %v203_v7  ;;  %453 = vmatmul.mubr.msk.f32.vlgmr.msra.gmra.mxu1 %vm232_vm0, %v205_v8 }
  0x15   : > { %229 = vperm.xlu1 %485, %v211_v9   ;;  %219 = vperm.xlu0 %484, %v209_v10  }
  0x8a   : > { %v225_v11 = vpop.permute.xlu1 %224  ;;  %v215_v12 = vpop.permute.xlu0 %214 }
  0x90   : > { %v230_v13 = vpop.permute.xlu1 %229  ;;  %v220_v14 = vpop.permute.xlu0 %219 }
  0xd4   : > { %v451_v15 = vpop.f32.mrf.mxu0  ;;  %v454_v16 = vpop.f32.mrf.mxu1 }
  0xd5   : > { %v317_v17 = vadd.f32 %v451_v15, %v220_v14  ;;  %v327_v18 = vadd.f32 %v454_v16, %v230_v13 }
  0xd6   : > { %v311_v19 = vpop.f32.mrf.mxu0  ;;  %v321_v20 = vpop.f32.mrf.mxu1 }
  0xd7   : > { %v331_v21 = vmax.f32 %v317_v17, 0.0  ;;  %v333_v22 = vmax.f32 %v327_v18, 0.0  ;;  %v312_v23 = vadd.f32 %v311_v19, %v215_v12  ;;  %v322_v24 = vadd.f32 %v321_v20, %v225_v11 }
  0xd9   : > { %336 = vst.msk [vmem:[%s201_s16 + $0x8] sm:$0xff] %vm334_vm1, %v331_v21  ;;  %338 = vst.msk [vmem:[%s201_s16 + $0x18] sm:$0xff] %vm334_vm1, %v333_v22  ;;  %v330_v25 = vmax.f32 %v312_v23, 0.0  ;;  %v332_v26 = vmax.f32 %v322_v24, 0.0 }
  0xdb   : > { %335 = vst.msk [vmem:[%s201_s16] sm:$0xff] %vm334_vm1, %v330_v25  ;;  %337 = vst.msk [vmem:[%s201_s16 + $0x10] sm:$0xff] %vm334_vm1, %v332_v26 }
  0xdc PF: > { %s13_s14 = sadd.s32 1, %s508_s14   ;;  %s600_s12 = smov %s504_s13 }
  0xdd   : > { %p10_p5 = scmp.ge.s32.totalorder %s13_s14, 4   ;;  %s601_s13 = smov %s603_s15 }
  0xdf   :  { %12 = sbr.rel (!%p10_p5) target bundleno = 2 (0x2), region = 62 }

// kernel: focus_forward.1
= control target key start
LH: loop header
LB: loop body
LE: loop exit
PB: predicated region body
PF: predicated region fallthrough
CT: control target
= control target key end

     0   :  { %s531_s12 = smov 0   ;;  %s533_s13 = smov 0   ;;  %s596_s0 = inlined_call_operand.vmem [shape: f32[32,16], index: 0, kind: input, shape index: {}]   ;;  %s597_s1 = inlined_call_operand.vmem [shape: f32[32,1], index: 1, kind: input, shape index: {}]   ;;  %s598_s2 = inlined_call_operand.vmem [shape: f32[2,16,64], index: 2, kind: input, shape index: {}]   ;;  %s599_s3 = inlined_call_operand.vmem [shape: f32[2,32,64], index: 3, kind: output, shape index: {}]  }
   0x1   :  { %s535_s14 = smov 0  }
   0x2 LB: > { %s25_s15 = sadd.s32 1, %s504_s13  ;;  %p426_p0 = scmp.ge.s32.totalorder %s508_s14, 1  ;;  %s508_s14 = sphi %s535_s14, %s13_s14   ;;  %s504_s13 = sphi %s533_s13, %s601_s13   ;;  %s500_s12 = sphi %s531_s12, %s600_s12  }
   0x3   : > { %p27_p1 = scmp.ge.s32.totalorder %s25_s15, 2  ;;  %p156_p2 = scmp.lt.s32.totalorder %s508_s14, 3 }
   0x5   : > { %s603_s15 = smov (%p27_p1, %s25_s15), 0  ;;  %p157_p3 = pnand %p426_p0, %p156_p2 }
   0x6   : > { %p186_p4 = scmp.lt.s32.totalorder (!%p157_p3), %s500_s12, 1 }
   0x7   : > { %160 = sbr.rel (%p157_p3) target bundleno = 220 (0xdc), region = 32 }
   0xc   : > { %v202_v0 = vld [vmem:[%s596_s0] sm:$0xff]  ;;  %vm232_vm0 = vcmask 130048   ;;  %v204_v1 = vld [vmem:[%s596_s0 + $0x10] sm:$0xff]  ;;  %s605_s12 = smov (!%p186_p4, %s500_s12), 1  ;;  %v510_v4 = vmov 0   ;;  %v203_v7 = vld [vmem:[%s596_s0 + $0x8] sm:$0xff] }
   0xd   : > { %449 = vmatprep.mubr.msk.f32.mxu0 %vm232_vm0, %v202_v0  ;;  %452 = vmatprep.mubr.msk.f32.mxu1 %vm232_vm0, %v204_v1  ;;  %v210_v2 = vld [vmem:[%s597_s1 + $0x10] sm:$0xff]  ;;  %v208_v3 = vld [vmem:[%s597_s1] sm:$0xff]  ;;  %s437_s24 = sshll.u32 %s605_s12, 4  ;;  %v205_v8 = vld [vmem:[%s596_s0 + $0x18] sm:$0xff]  ;;  %s438_s9 = sshll.u32 %s605_s12, 5  ;;  %vm334_vm1 = vcmask 523264  }
   0xe   : > { %485 = vset.pattern.permute.xlu1 %v510_v4  ;;  %484 = vset.pattern.permute.xlu0 %v510_v4  ;;  %s193_s27 = scalar_lea.vmem %s598_s2, %s437_s24  ;;  %v211_v9 = vld [vmem:[%s597_s1 + $0x18] sm:$0xff]  ;;  %v209_v10 = vld [vmem:[%s597_s1 + $0x8] sm:$0xff]  ;;  %s201_s16 = scalar_lea.vmem %s599_s3, %s438_s9 }
   0xf   : > { %224 = vperm.xlu1 %485, %v210_v2   ;;  %214 = vperm.xlu0 %484, %v208_v3   ;;  %v207_v5 = vld [vmem:[%s193_s27 + $0x8] sm:$0xff]  ;;  %v206_v6 = vld [vmem:[%s193_s27] sm:$0xff] }
  0x10   : > { %445 = vmatprep.subr.mxu0 %v207_v5  ;;  %455 = vmatprep.subr.mxu1 %v207_v5 }
  0x11   : > { %446 = vmatpush3.msra.mxu0 %v207_v5  ;;  %457 = vmatpush3.msra.mxu1 %v207_v5 }
  0x12   : > { %447 = vmatprep.subr.mxu0 %v206_v6  ;;  %456 = vmatprep.subr.mxu1 %v206_v6 }
  0x13   : > { %448 = vmatpush3.msra.mxu0 %v206_v6  ;;  %458 = vmatpush3.msra.mxu1 %v206_v6 }
  0x14   : > { %450 = vmatmul.mubr.msk.f32.vlgmr.msra.gmra.mxu0 %vm232_vm0, %v203_v7  ;;  %453 = vmatmul.mubr.msk.f32.vlgmr.msra.gmra.mxu1 %vm232_vm0, %v205_v8 }
  0x15   : > { %229 = vperm.xlu1 %485, %v211_v9   ;;  %219 = vperm.xlu0 %484, %v209_v10  }
  0x8a   : > { %v225_v11 = vpop.permute.xlu1 %224  ;;  %v215_v12 = vpop.permute.xlu0 %214 }
  0x90   : > { %v230_v13 = vpop.permute.xlu1 %229  ;;  %v220_v14 = vpop.permute.xlu0 %219 }
  0xd4   : > { %v451_v15 = vpop.f32.mrf.mxu0  ;;  %v454_v16 = vpop.f32.mrf.mxu1 }
  0xd5   : > { %v317_v17 = vadd.f32 %v451_v15, %v220_v14  ;;  %v327_v18 = vadd.f32 %v454_v16, %v230_v13 }
  0xd6   : > { %v311_v19 = vpop.f32.mrf.mxu0  ;;  %v321_v20 = vpop.f32.mrf.mxu1 }
  0xd7   : > { %v331_v21 = vmax.f32 %v317_v17, 0.0  ;;  %v333_v22 = vmax.f32 %v327_v18, 0.0  ;;  %v312_v23 = vadd.f32 %v311_v19, %v215_v12  ;;  %v322_v24 = vadd.f32 %v321_v20, %v225_v11 }
  0xd9   : > { %336 = vst.msk [vmem:[%s201_s16 + $0x8] sm:$0xff] %vm334_vm1, %v331_v21  ;;  %338 = vst.msk [vmem:[%s201_s16 + $0x18] sm:$0xff] %vm334_vm1, %v333_v22  ;;  %v330_v25 = vmax.f32 %v312_v23, 0.0  ;;  %v332_v26 = vmax.f32 %v322_v24, 0.0 }
  0xdb   : > { %335 = vst.msk [vmem:[%s201_s16] sm:$0xff] %vm334_vm1, %v330_v25  ;;  %337 = vst.msk [vmem:[%s201_s16 + $0x10] sm:$0xff] %vm334_vm1, %v332_v26 }
  0xdc PF: > { %s13_s14 = sadd.s32 1, %s508_s14   ;;  %s600_s12 = smov %s504_s13 }
  0xdd   : > { %p10_p5 = scmp.ge.s32.totalorder %s13_s14, 4   ;;  %s601_s13 = smov %s603_s15 }
  0xdf   :  { %12 = sbr.rel (!%p10_p5) target bundleno = 2 (0x2), region = 62 }

</bundles_post_ra>
